<compile_context>
chip_gen: v5e
topology: v5e:2x2
jax: 0.10.0
libtpu: 0.0.40
codegen_flags: <defaults>
</compile_context>

<pallas_src>
import functools

import jax
import jax.numpy as jnp
from jax.experimental import pallas as pl
from jax.experimental.pallas import tpu as pltpu


def _round_up(x, n):
    return ((x + n - 1) // n) * n


def _pick_tiles(N, C, tm, tc):
    if tc is None:
        tc = min(_round_up(max(C, 1), 128), 2048)
    if tm is None:
        tm_cap = 256  # safe under v5e's 16 MiB default scoped VMEM
        try:
            kind = jax.devices()[0].device_kind.lower()
            if ("v6" in kind) or ("v7" in kind):
                tm_cap = 512  # 4 MiB tiles -> 16 MiB double-buffered, OK on v6e/v7x
        except Exception:
            pass
        tm = min(_round_up(max(N, 1), 8), tm_cap)
    return tm, tc


def arcface_kernel(cos_ref, label_ref, corr_ref, out_ref, *, s, tc):
    # Grid is (class_tile, row_tile): class axis outermost for v7x megacore.
    x = cos_ref[...]                                     # (tm, tc) tile

    # Local (in-tile) target column per row.  label == -1 (or a label living in
    # another class tile) maps to a negative / >= tc local index and can never
    # match the non-negative in-tile iota -> those rows are pure x * s.
    lbl_local = label_ref[...] - pl.program_id(0) * tc   # (tm, 1) int32
    col = jax.lax.broadcasted_iota(jnp.int32, x.shape, 1)
    is_target = col == lbl_local                         # one VALU compare / vreg

    # Target column gets the precomputed corrected logit; everything else is
    # cos(acos(x)) * s == x * s (no transcendentals in the kernel).
    out_ref[...] = jnp.where(is_target, corr_ref[...], x * s).astype(out_ref.dtype)


def arcface(cosine, label, *, s=64.0, m=0.5, a=1.2, k=0.1, tm=None, tc=None):
    """cosine: (N, C) f32 logits in [-1, 1]; label: (N,) int32, -1 = ignore."""
    N, C = cosine.shape
    tm, tc = _pick_tiles(N, C, tm, tc)

    label_i32 = label.astype(jnp.int32)
    label2d = label_i32.reshape(N, 1)

    # Per-row corrected target logit, computed once here (O(N) work) instead of
    # once per class tile inside the kernel:
    #   t = acos(x_t) + m ; t = t - k*(t - a)  ==>  t = (1-k)*(acos(x_t)+m) + k*a
    safe_lbl = jnp.clip(label_i32, 0, C - 1)             # label==-1 rows unused
    cos_t = jnp.take_along_axis(cosine, safe_lbl[:, None], axis=1)        # (N, 1)
    theta_t = jnp.arccos(jnp.clip(cos_t, -1.0, 1.0))     # clip: intentional guard
    theta_t = (1.0 - k) * theta_t + ((1.0 - k) * m + k * a)
    corrected = (jnp.cos(theta_t) * s).astype(cosine.dtype)               # (N, 1)

    kernel = functools.partial(arcface_kernel, s=s, tc=tc)

    # Class axis outermost so megacore (v7x) splits the large dimension.
    grid = (pl.cdiv(C, tc), pl.cdiv(N, tm))

    cost = pl.CostEstimate(
        flops=3 * N * C,                      # compare + select + scale (approx.)
        transcendentals=0,                    # acos/cos done on (N,1) in wrapper
        bytes_accessed=2 * N * C * cosine.dtype.itemsize + 2 * N * 4,
    )

    out = pl.pallas_call(
        kernel,
        out_shape=jax.ShapeDtypeStruct((N, C), cosine.dtype),
        grid_spec=pltpu.PrefetchScalarGridSpec(
            num_scalar_prefetch=0,
            grid=grid,
            in_specs=[
                pl.BlockSpec((tm, tc), lambda j, i: (i, j)),   # cosine tile
                pl.BlockSpec((tm, 1), lambda j, i: (i, 0)),    # labels (per row-tile)
                pl.BlockSpec((tm, 1), lambda j, i: (i, 0)),    # corrected logits
            ],
            out_specs=pl.BlockSpec((tm, tc), lambda j, i: (i, j)),
        ),
        compiler_params=pltpu.CompilerParams(
            dimension_semantics=("parallel", "parallel")),
        cost_estimate=cost,
    )(cosine, label2d, corrected)
    return out


def arcface_ref(cosine, label, s=64.0, m=0.5, a=1.2, k=0.1):
    """Pure-JAX reference mirroring the PyTorch forward."""
    theta = jnp.arccos(cosine)
    col = jnp.arange(cosine.shape[1], dtype=jnp.int32)[None, :]
    mask = (col == label[:, None]) & (label[:, None] != -1)
    t = theta + m
    t = t - k * (t - a)
    theta = jnp.where(mask, t, theta)
    return jnp.cos(theta) * s


if __name__ == "__main__":
    key = jax.random.PRNGKey(0)
    k1, k2 = jax.random.split(key)

    N, C = 8, 256  # small: 8 samples, 256 classes
    cosine = jax.random.uniform(k1, (N, C), jnp.float32, minval=-0.99, maxval=0.99)
    label = jax.random.randint(k2, (N,), 0, C, dtype=jnp.int32)
    # mark a couple of rows as "ignore" (label == -1), like the torch.where filter
    label = label.at[1].set(-1).at[5].set(-1)

    out = arcface(cosine, label)
    jax.block_until_ready(out)

    ref = arcface_ref(cosine, label)
    assert out.shape == (N, C) and out.dtype == jnp.float32
    assert jnp.allclose(out, ref, atol=1e-3, rtol=1e-3), float(
        jnp.max(jnp.abs(out - ref)))

    # also exercise non-tile-multiple shapes -> ragged edge blocks, 3x3 grid,
    # no wrapper-side padding or slicing.
    N2, C2 = 37, 300
    k3, k4 = jax.random.split(k2)
    cos2 = jax.random.uniform(k3, (N2, C2), jnp.float32, minval=-0.99, maxval=0.99)
    lbl2 = jax.random.randint(k4, (N2,), 0, C2, dtype=jnp.int32)
    lbl2 = lbl2.at[3].set(-1)
    out2 = arcface(cos2, lbl2, tm=16, tc=128)
    jax.block_until_ready(out2)
    ref2 = arcface_ref(cos2, lbl2)
    assert out2.shape == (N2, C2)
    assert jnp.allclose(out2, ref2, atol=1e-3, rtol=1e-3), float(
        jnp.max(jnp.abs(out2 - ref2)))

    print("KERNEL_OK")
</pallas_src>

<mosaic_0001>
module attributes {stable_mosaic.version = 11 : i64} {
  func.func @arcface_kernel(%arg0: i32, %arg1: i32, %arg2: memref<8x256xf32, #tpu.memory_space<vmem>>, %arg3: memref<8x1xi32, #tpu.memory_space<vmem>>, %arg4: memref<8x1xf32, #tpu.memory_space<vmem>>, %arg5: memref<8x256xf32, #tpu.memory_space<vmem>>) attributes {dimension_semantics = [#tpu.dimension_semantics<parallel>, #tpu.dimension_semantics<parallel>], iteration_bounds = array<i64: 1, 1>, scalar_prefetch = 0 : i64, scratch_operands = 0 : i64, tpu.core_type = #tpu.core_type<tc>, window_params = [{transform_indices = @transform_0, window_bounds = array<i64: 8, 256>}, {transform_indices = @transform_1, window_bounds = array<i64: 8, 1>}, {transform_indices = @transform_2, window_bounds = array<i64: 8, 1>}, {transform_indices = @transform_3, window_bounds = array<i64: 8, 256>}]} {
    %c0 = arith.constant 0 : index
    %c0_0 = arith.constant 0 : index
    %0 = vector.load %arg2[%c0, %c0_0] : memref<8x256xf32, #tpu.memory_space<vmem>>, vector<8x256xf32>
    %c0_1 = arith.constant 0 : index
    %c0_2 = arith.constant 0 : index
    %1 = vector.load %arg3[%c0_1, %c0_2] : memref<8x1xi32, #tpu.memory_space<vmem>>, vector<8x1xi32>
    %c256_i32 = arith.constant 256 : i32
    %2 = arith.muli %arg0, %c256_i32 : i32
    %3 = vector.broadcast %2 : i32 to vector<8x1xi32>
    %4 = arith.subi %1, %3 : vector<8x1xi32>
    %5 = tpu.iota {dimensions = array<i32: 1>} : vector<8x256xi32>
    %6 = vector.broadcast %4 : vector<8x1xi32> to vector<8x256xi32>
    %7 = arith.cmpi eq, %5, %6 : vector<8x256xi32>
    %c0_3 = arith.constant 0 : index
    %c0_4 = arith.constant 0 : index
    %8 = vector.load %arg4[%c0_3, %c0_4] : memref<8x1xf32, #tpu.memory_space<vmem>>, vector<8x1xf32>
    %cst = arith.constant 6.400000e+01 : f32
    %9 = vector.broadcast %cst : f32 to vector<8x256xf32>
    %10 = arith.mulf %0, %9 : vector<8x256xf32>
    %11 = vector.shape_cast %8 : vector<8x1xf32> to vector<8x1xf32>
    %12 = vector.broadcast %11 : vector<8x1xf32> to vector<8x256xf32>
    %13 = arith.select %7, %12, %10 : vector<8x256xi1>, vector<8x256xf32>
    %c0_5 = arith.constant 0 : index
    %c0_6 = arith.constant 0 : index
    %14 = vector.load %arg5[%c0_5, %c0_6] : memref<8x256xf32, #tpu.memory_space<vmem>>, vector<8x256xf32>
    tpu.vector_store %arg5[%c0_5, %c0_6], %13 {strides = array<i32>} : memref<8x256xf32, #tpu.memory_space<vmem>>, vector<8x256xf32>,
    return
  }
  func.func @transform_0(%arg0: i32, %arg1: i32) -> (i32, i32) {
    %c0_i32 = arith.constant 0 : i32
    return %arg1, %arg0 : i32, i32
  }
  func.func @transform_1(%arg0: i32, %arg1: i32) -> (i32, i32) {
    %c0_i32 = arith.constant 0 : i32
    %c0_i32_0 = arith.constant 0 : i32
    return %arg1, %c0_i32 : i32, i32
  }
  func.func @transform_2(%arg0: i32, %arg1: i32) -> (i32, i32) {
    %c0_i32 = arith.constant 0 : i32
    %c0_i32_0 = arith.constant 0 : i32
    return %arg1, %c0_i32 : i32, i32
  }
  func.func @transform_3(%arg0: i32, %arg1: i32) -> (i32, i32) {
    %c0_i32 = arith.constant 0 : i32
    return %arg1, %arg0 : i32, i32
  }
}

</mosaic_0001>

<bundles_post_ra>
// kernel: tpu_custom_call.1
= control target key start
LH: loop header
LB: loop body
LE: loop exit
PB: predicated region body
PF: predicated region fallthrough
CT: control target
= control target key end

     0   :  { %s123_s0 = inlined_call_operand.vmem [shape: f32[8,256], index: 0, kind: input, shape index: {}]   ;;  %s124_s1 = inlined_call_operand.vmem [shape: s32[8,1], index: 1, kind: input, shape index: {}]   ;;  %s125_s2 = inlined_call_operand.vmem [shape: f32[8,1], index: 2, kind: input, shape index: {}]   ;;  %s126_s3 = inlined_call_operand.hbm [shape: f32[8,256], index: 3, kind: output, shape index: {}]  }
   0x1   :  { %v17_v0 = vld [vmem:[%s124_s1] sm:$0xff] }
   0x2   :  { %8 = vsyncpa [#allocation3], 0  ;;  %v86_v1 = vmov 0   ;;  %v29_v2 = vld [vmem:[%s125_s2] sm:$0xff]  ;;  %v21_v3 = vlaneseq  ;;  %v16_v7 = vld [vmem:[%s123_s0 + $0x8] sm:$0xff]  ;;  %s87_s1 = smov [#allocation2]  }
   0x3   :  { %59 = vset.pattern.permute.xlu0 %v86_v1  ;;  %v15_v6 = vld [vmem:[%s123_s0] sm:$0xff]  ;;  %v31_v10 = vmul.f32 64.0, %v16_v7  ;;  %s46_s20 = sshll.u32 %s87_s1, 4  ;;  %s48_s2 = sshll.u32 %s126_s3, 4  ;;  %s47_s20 = int_to_ptr.vmem [resolvable:$true] %s46_s20  ;;  %s49_s2 = int_to_ptr.hbm [resolvable:$true] %s48_s2 }
   0x4   :  { %25 = vperm.xlu0 %59, %v17_v0   ;;  %v22_v4 = vand.u32 127, %v21_v3  ;;  %v30_v9 = vmul.f32 64.0, %v15_v6 }
   0x6   :  { %v23_v8 = vadd.s32 128, %v22_v4 }
   0xc   :  { %34 = vperm.xlu0 %59, %v29_v2  }
  0x76   :  { %v26_v5 = vpop.permute.xlu0 %25 }
  0x77   :  { %vm27_vm0 = vcmp.eq.s32.totalorder %v22_v4, %v26_v5  ;;  %vm28_vm1 = vcmp.eq.s32.totalorder %v23_v8, %v26_v5 }
  0x7e   :  { %v35_v11 = vpop.permute.xlu0 %34 }
  0x7f   :  { %v37_v12 = vsel %vm27_vm0, %v35_v11, %v30_v9  ;;  %v38_v13 = vsel %vm28_vm1, %v35_v11, %v31_v10 }
  0x80   :  { %39 = vst [vmem:[#allocation2] sm:$0xff] %v37_v12 }
  0x81   :  { %40 = vst [vmem:[#allocation2 + $0x8] sm:$0xff] %v38_v13 }
  0x82   :  { %51 = dma.vmem_to_hbm [thread:$0]  %s47_s20, 256, %s49_s2, [#allocation3]  }
  0x83   :  { %84 = dma.done.wait [#allocation3], 256  }
  0x84   :  { %85 = vsyncadd [#allocation3], 4294967040 }
  0x85   :  { %56 = vsyncpa [#allocation3], 1 }

</bundles_post_ra>
